<compile_context>
chip_gen: v6e
topology: v6e:2x2x1
jax: 0.10.0
libtpu: 0.0.40
codegen_flags: <defaults>
</compile_context>

<pallas_src>
import functools

import jax
import jax.numpy as jnp
from jax import lax
from jax.experimental import pallas as pl
from jax.experimental.pallas import tpu as pltpu

FEAT = 20  # fixed by the module definition


def _fixed_hidden_mlp_kernel(x_ref, w1_ref, b1_ref, wt_ref, b_ref,
                             out_ref, abs_acc, sum_acc, stage,
                             *, batch, tb, mask_tail):
    i = pl.program_id(0)

    @pl.when(i == 0)
    def _init():
        abs_acc[...] = jnp.zeros_like(abs_acc)
        sum_acc[...] = jnp.zeros_like(sum_acc)

    x = x_ref[...]                                            # (tb, 20) f32

    # relu(x @ (W.T @ rw) + (b @ rw + 1))  -- fused first two matmuls
    h = jnp.dot(x, w1_ref[...], preferred_element_type=jnp.float32) + b1_ref[...]
    h = jnp.maximum(h, 0.0)
    # second application of the shared linear layer
    h = jnp.dot(h, wt_ref[...], preferred_element_type=jnp.float32) + b_ref[...]

    if mask_tail:
        # Zero rows beyond the true batch (padded tail) before reducing.
        row = lax.broadcasted_iota(jnp.int32, h.shape, 0) + i * tb
        h = jnp.where(row < batch, h, 0.0)

    # Per-lane partial reductions; cross-lane reduce + scalar extraction are
    # deferred to the final grid step.
    abs_acc[...] += jnp.sum(jnp.abs(h), axis=0, keepdims=True)
    sum_acc[...] += jnp.sum(h, axis=0, keepdims=True)

    @pl.when(i == pl.num_programs(0) - 1)
    def _finalize():
        stage[0] = jnp.sum(abs_acc[...])      # full abs-sum
        stage[1] = jnp.sum(sum_acc[...])      # full sum
        abs_sum = stage[0]
        total = stage[1]

        # while X.abs().sum() > 1: X /= 2  -> halve both reductions in lockstep
        def cond(c):
            return c[0] > 1.0

        def body(c):
            return c[0] * 0.5, c[1] * 0.5

        _, total = lax.while_loop(cond, body, (abs_sum, total))
        out_ref[0] = total


def fixed_hidden_mlp(x, w, b, rand_weight, *, tb=4096):
    """x: (B, 20) f32; w: (20, 20) Linear weight (PyTorch out x in convention);
    b: (20,) bias; rand_weight: (20, 20). Returns scalar f32."""
    B = x.shape[0]
    x = x.astype(jnp.float32)
    wt = w.T.astype(jnp.float32)                      # (20, 20) == W.T
    rw = rand_weight.astype(jnp.float32)
    b = b.astype(jnp.float32)

    # Algebraic fusion of the first two matmuls (exact, done once, tiny).
    w1 = wt @ rw                                      # (20, 20)
    b1 = (b @ rw + 1.0).reshape(1, FEAT)              # (1, 20)
    b2 = b.reshape(1, FEAT)                           # (1, 20)

    # Batch tile: multiple of 8 sublanes, never larger than the padded batch.
    tb = max(8, min(tb, ((B + 7) // 8) * 8))
    padded_b = ((B + tb - 1) // tb) * tb
    if padded_b != B:
        x = jnp.pad(x, ((0, padded_b - B), (0, 0)))
    grid = (padded_b // tb,)
    mask_tail = padded_b != B

    kernel = functools.partial(
        _fixed_hidden_mlp_kernel, batch=B, tb=tb, mask_tail=mask_tail)

    flops = 2 * 2 * padded_b * FEAT * FEAT            # two matmuls per row
    bytes_accessed = padded_b * FEAT * 4 + (2 * FEAT * FEAT + 2 * FEAT) * 4 + 4

    out = pl.pallas_call(
        kernel,
        out_shape=jax.ShapeDtypeStruct((1,), jnp.float32),
        grid=grid,
        in_specs=[
            pl.BlockSpec((tb, FEAT), lambda i: (i, 0)),       # x tile (pipelined)
            pl.BlockSpec((FEAT, FEAT), lambda i: (0, 0)),     # W1 (resident)
            pl.BlockSpec((1, FEAT), lambda i: (0, 0)),        # b1 (resident)
            pl.BlockSpec((FEAT, FEAT), lambda i: (0, 0)),     # W.T (resident)
            pl.BlockSpec((1, FEAT), lambda i: (0, 0)),        # b   (resident)
        ],
        out_specs=pl.BlockSpec(memory_space=pltpu.MemorySpace.SMEM),
        scratch_shapes=[
            pltpu.VMEM((1, FEAT), jnp.float32),   # per-lane abs-sum accumulator
            pltpu.VMEM((1, FEAT), jnp.float32),   # per-lane sum accumulator
            pltpu.SMEM((2,), jnp.float32),        # staged scalars for the while-loop
        ],
        compiler_params=pltpu.CompilerParams(
            dimension_semantics=("arbitrary",),
            vmem_limit_bytes=32 << 20),
        cost_estimate=pl.CostEstimate(
            flops=flops, transcendentals=0, bytes_accessed=bytes_accessed),
    )(x, w1, b1, wt, b2)
    return out[0]


def reference(x, w, b, rand_weight):
    # Pure-JAX reference with the ORIGINAL (unfused) op ordering.
    h = x @ w.T + b
    h = jnp.maximum(h @ rand_weight + 1.0, 0.0)
    h = h @ w.T + b
    a = jnp.sum(jnp.abs(h))
    t = jnp.sum(h)

    def cond(c):
        return c[0] > 1.0

    def body(c):
        return c[0] * 0.5, c[1] * 0.5

    _, t = lax.while_loop(cond, body, (a, t))
    return t


if __name__ == "__main__":
    key = jax.random.PRNGKey(0)
    k_x, k_w, k_b, k_rw, k_x2 = jax.random.split(key, 5)

    B = 2
    x = jax.random.normal(k_x, (B, FEAT), dtype=jnp.float32)
    # nn.Linear(20, 20): weight (20, 20), bias (20,) -- deterministic synthetic init
    bound = 1.0 / (FEAT ** 0.5)
    w = jax.random.uniform(k_w, (FEAT, FEAT), jnp.float32, -bound, bound)
    b = jax.random.uniform(k_b, (FEAT,), jnp.float32, -bound, bound)
    # torch.rand((20, 20)) -> uniform [0, 1)
    rand_weight = jax.random.uniform(k_rw, (FEAT, FEAT), jnp.float32, 0.0, 1.0)

    out = fixed_hidden_mlp(x, w, b, rand_weight)
    jax.block_until_ready(out)
    ref = reference(x, w, b, rand_weight)
    assert jnp.allclose(out, ref, rtol=1e-4, atol=1e-4), (out, ref)

    # Exercise the multi-tile grid + ragged-tail masking path.
    x2 = jax.random.normal(k_x2, (100, FEAT), dtype=jnp.float32)
    out2 = fixed_hidden_mlp(x2, w, b, rand_weight, tb=32)
    jax.block_until_ready(out2)
    ref2 = reference(x2, w, b, rand_weight)
    assert jnp.allclose(out2, ref2, rtol=1e-4, atol=1e-4), (out2, ref2)

    print("KERNEL_OK")
</pallas_src>

<mosaic_0001>
module attributes {stable_mosaic.version = 11 : i64} {
  func.func @_fixed_hidden_mlp_kernel(%arg0: i32, %arg1: memref<8x20xf32, #tpu.memory_space<vmem>>, %arg2: memref<20x20xf32, #tpu.memory_space<vmem>>, %arg3: memref<1x20xf32, #tpu.memory_space<vmem>>, %arg4: memref<20x20xf32, #tpu.memory_space<vmem>>, %arg5: memref<1x20xf32, #tpu.memory_space<vmem>>, %arg6: memref<1xf32, #tpu.memory_space<smem>>, %arg7: memref<1x20xf32, #tpu.memory_space<vmem>>, %arg8: memref<1x20xf32, #tpu.memory_space<vmem>>, %arg9: memref<2xf32, #tpu.memory_space<smem>>) attributes {dimension_semantics = [#tpu.dimension_semantics<arbitrary>], iteration_bounds = array<i64: 1>, scalar_prefetch = 0 : i64, scratch_operands = 3 : i64, tpu.core_type = #tpu.core_type<tc>, window_params = [{transform_indices = @transform_0, window_bounds = array<i64: 8, 20>}, {pipeline_mode = #tpu.pipeline_mode<synchronous>, transform_indices = @transform_1, window_bounds = array<i64: 20, 20>}, {pipeline_mode = #tpu.pipeline_mode<synchronous>, transform_indices = @transform_2, window_bounds = array<i64: 1, 20>}, {pipeline_mode = #tpu.pipeline_mode<synchronous>, transform_indices = @transform_3, window_bounds = array<i64: 20, 20>}, {pipeline_mode = #tpu.pipeline_mode<synchronous>, transform_indices = @transform_4, window_bounds = array<i64: 1, 20>}, {transform_indices = @transform_5, window_bounds = array<i64: 1>}]} {
    %c0_i32 = arith.constant 0 : i32
    %0 = arith.cmpi eq, %arg0, %c0_i32 : i32
    %1 = arith.extui %0 : i1 to i32
    %c0_i32_0 = arith.constant 0 : i32
    %2 = arith.cmpi ne, %1, %c0_i32_0 : i32
    scf.if %2 {
      %cst_25 = arith.constant 0.000000e+00 : f32
      %38 = vector.broadcast %cst_25 : f32 to vector<1x20xf32>
      %c0_26 = arith.constant 0 : index
      %c0_27 = arith.constant 0 : index
      %39 = vector.load %arg7[%c0_26, %c0_27] : memref<1x20xf32, #tpu.memory_space<vmem>>, vector<1x20xf32>
      tpu.vector_store %arg7[%c0_26, %c0_27], %38 {strides = array<i32>} : memref<1x20xf32, #tpu.memory_space<vmem>>, vector<1x20xf32>,
      %cst_28 = arith.constant 0.000000e+00 : f32
      %40 = vector.broadcast %cst_28 : f32 to vector<1x20xf32>
      %c0_29 = arith.constant 0 : index
      %c0_30 = arith.constant 0 : index
      %41 = vector.load %arg8[%c0_29, %c0_30] : memref<1x20xf32, #tpu.memory_space<vmem>>, vector<1x20xf32>
      tpu.vector_store %arg8[%c0_29, %c0_30], %40 {strides = array<i32>} : memref<1x20xf32, #tpu.memory_space<vmem>>, vector<1x20xf32>,
    } else {
    }
    %c0 = arith.constant 0 : index
    %c0_1 = arith.constant 0 : index
    %3 = vector.load %arg1[%c0, %c0_1] : memref<8x20xf32, #tpu.memory_space<vmem>>, vector<8x20xf32>
    %c0_2 = arith.constant 0 : index
    %c0_3 = arith.constant 0 : index
    %4 = vector.load %arg2[%c0_2, %c0_3] : memref<20x20xf32, #tpu.memory_space<vmem>>, vector<20x20xf32>
    %cst = arith.constant dense<0.000000e+00> : vector<8x20xf32>
    %5 = tpu.matmul %3, %4, %cst {dimension_numbers = #tpu.dot_dimension_numbers<[1], [0], [0], [1], [0, 0, 1, 1], [], []>} : vector<8x20xf32>, vector<20x20xf32>, vector<8x20xf32> -> vector<8x20xf32>
    %c0_4 = arith.constant 0 : index
    %c0_5 = arith.constant 0 : index
    %6 = vector.load %arg3[%c0_4, %c0_5] : memref<1x20xf32, #tpu.memory_space<vmem>>, vector<1x20xf32>
    %7 = vector.broadcast %6 : vector<1x20xf32> to vector<8x20xf32>
    %8 = arith.addf %5, %7 : vector<8x20xf32>
    %cst_6 = arith.constant 0.000000e+00 : f32
    %9 = vector.broadcast %cst_6 : f32 to vector<8x20xf32>
    %10 = arith.maximumf %8, %9 : vector<8x20xf32>
    %c0_7 = arith.constant 0 : index
    %c0_8 = arith.constant 0 : index
    %11 = vector.load %arg4[%c0_7, %c0_8] : memref<20x20xf32, #tpu.memory_space<vmem>>, vector<20x20xf32>
    %cst_9 = arith.constant dense<0.000000e+00> : vector<8x20xf32>
    %12 = tpu.matmul %10, %11, %cst_9 {dimension_numbers = #tpu.dot_dimension_numbers<[1], [0], [0], [1], [0, 0, 1, 1], [], []>} : vector<8x20xf32>, vector<20x20xf32>, vector<8x20xf32> -> vector<8x20xf32>
    %c0_10 = arith.constant 0 : index
    %c0_11 = arith.constant 0 : index
    %13 = vector.load %arg5[%c0_10, %c0_11] : memref<1x20xf32, #tpu.memory_space<vmem>>, vector<1x20xf32>
    %14 = vector.broadcast %13 : vector<1x20xf32> to vector<8x20xf32>
    %15 = arith.addf %12, %14 : vector<8x20xf32>
    %16 = tpu.iota {dimensions = array<i32: 0>} : vector<8x20xi32>
    %c8_i32 = arith.constant 8 : i32
    %17 = arith.muli %arg0, %c8_i32 : i32
    %18 = vector.broadcast %17 : i32 to vector<8x20xi32>
    %19 = arith.addi %16, %18 : vector<8x20xi32>
    %c2_i32 = arith.constant 2 : i32
    %20 = vector.broadcast %c2_i32 : i32 to vector<8x20xi32>
    %21 = arith.cmpi slt, %19, %20 : vector<8x20xi32>
    %cst_12 = arith.constant 0.000000e+00 : f32
    %22 = vector.broadcast %cst_12 : f32 to vector<8x20xf32>
    %23 = arith.select %21, %15, %22 : vector<8x20xi1>, vector<8x20xf32>
    %c0_13 = arith.constant 0 : index
    %c0_14 = arith.constant 0 : index
    %24 = vector.load %arg7[%c0_13, %c0_14] : memref<1x20xf32, #tpu.memory_space<vmem>>, vector<1x20xf32>
    %25 = math.absf %23 : vector<8x20xf32>
    %cst_15 = arith.constant dense<0.000000e+00> : vector<20xf32>
    %26 = vector.multi_reduction <add>, %25, %cst_15 [0] : vector<8x20xf32> to vector<20xf32>
    %27 = vector.shape_cast %26 : vector<20xf32> to vector<1x20xf32>
    %28 = arith.addf %24, %27 : vector<1x20xf32>
    %c0_16 = arith.constant 0 : index
    %c0_17 = arith.constant 0 : index
    %29 = vector.load %arg7[%c0_16, %c0_17] : memref<1x20xf32, #tpu.memory_space<vmem>>, vector<1x20xf32>
    tpu.vector_store %arg7[%c0_16, %c0_17], %28 {strides = array<i32>} : memref<1x20xf32, #tpu.memory_space<vmem>>, vector<1x20xf32>,
    %c0_18 = arith.constant 0 : index
    %c0_19 = arith.constant 0 : index
    %30 = vector.load %arg8[%c0_18, %c0_19] : memref<1x20xf32, #tpu.memory_space<vmem>>, vector<1x20xf32>
    %cst_20 = arith.constant dense<0.000000e+00> : vector<20xf32>
    %31 = vector.multi_reduction <add>, %23, %cst_20 [0] : vector<8x20xf32> to vector<20xf32>
    %32 = vector.shape_cast %31 : vector<20xf32> to vector<1x20xf32>
    %33 = arith.addf %30, %32 : vector<1x20xf32>
    %c0_21 = arith.constant 0 : index
    %c0_22 = arith.constant 0 : index
    %34 = vector.load %arg8[%c0_21, %c0_22] : memref<1x20xf32, #tpu.memory_space<vmem>>, vector<1x20xf32>
    tpu.vector_store %arg8[%c0_21, %c0_22], %33 {strides = array<i32>} : memref<1x20xf32, #tpu.memory_space<vmem>>, vector<1x20xf32>,
    %c0_i32_23 = arith.constant 0 : i32
    %35 = arith.cmpi eq, %arg0, %c0_i32_23 : i32
    %36 = arith.extui %35 : i1 to i32
    %c0_i32_24 = arith.constant 0 : i32
    %37 = arith.cmpi ne, %36, %c0_i32_24 : i32
    scf.if %37 {
      %c0_25 = arith.constant 0 : index
      %c0_26 = arith.constant 0 : index
      %38 = vector.load %arg7[%c0_25, %c0_26] : memref<1x20xf32, #tpu.memory_space<vmem>>, vector<1x20xf32>
      %39 = vector.shape_cast %38 : vector<1x20xf32> to vector<1x1x20xf32>
      %cst_27 = arith.constant dense<0.000000e+00> : vector<1xf32>
      %40 = vector.multi_reduction <add>, %39, %cst_27 [1, 2] : vector<1x1x20xf32> to vector<1xf32>
      %41 = vector.shape_cast %40 : vector<1xf32> to vector<1x1x1xf32>
      %42 = vector.extract %41[0, 0, 0] : f32 from vector<1x1x1xf32>
      %c0_28 = arith.constant 0 : index
      %43 = memref.load %arg9[%c0_28] : memref<2xf32, #tpu.memory_space<smem>>
      memref.store %42, %arg9[%c0_28] : memref<2xf32, #tpu.memory_space<smem>>
      %c0_29 = arith.constant 0 : index
      %c0_30 = arith.constant 0 : index
      %44 = vector.load %arg8[%c0_29, %c0_30] : memref<1x20xf32, #tpu.memory_space<vmem>>, vector<1x20xf32>
      %45 = vector.shape_cast %44 : vector<1x20xf32> to vector<1x1x20xf32>
      %cst_31 = arith.constant dense<0.000000e+00> : vector<1xf32>
      %46 = vector.multi_reduction <add>, %45, %cst_31 [1, 2] : vector<1x1x20xf32> to vector<1xf32>
      %47 = vector.shape_cast %46 : vector<1xf32> to vector<1x1x1xf32>
      %48 = vector.extract %47[0, 0, 0] : f32 from vector<1x1x1xf32>
      %c1 = arith.constant 1 : index
      %49 = memref.load %arg9[%c1] : memref<2xf32, #tpu.memory_space<smem>>
      memref.store %48, %arg9[%c1] : memref<2xf32, #tpu.memory_space<smem>>
      %c0_32 = arith.constant 0 : index
      %50 = memref.load %arg9[%c0_32] : memref<2xf32, #tpu.memory_space<smem>>
      %c1_33 = arith.constant 1 : index
      %51 = memref.load %arg9[%c1_33] : memref<2xf32, #tpu.memory_space<smem>>
      %52:2 = scf.while (%arg10 = %50, %arg11 = %51) : (f32, f32) -> (f32, f32) {
        %cst_35 = arith.constant 1.000000e+00 : f32
        %54 = arith.cmpf ogt, %arg10, %cst_35 : f32
        scf.condition(%54) %arg10, %arg11 : f32, f32
      } do {
      ^bb0(%arg10: f32, %arg11: f32):
        %cst_35 = arith.constant 5.000000e-01 : f32
        %54 = arith.mulf %arg10, %cst_35 : f32
        %cst_36 = arith.constant 5.000000e-01 : f32
        %55 = arith.mulf %arg11, %cst_36 : f32
        scf.yield %54, %55 : f32, f32
      }
      %c0_34 = arith.constant 0 : index
      %53 = memref.load %arg6[%c0_34] : memref<1xf32, #tpu.memory_space<smem>>
      memref.store %52#1, %arg6[%c0_34] : memref<1xf32, #tpu.memory_space<smem>>
    } else {
    }
    return
  }
  func.func @transform_0(%arg0: i32) -> (i32, i32) {
    %c0_i32 = arith.constant 0 : i32
    %c0_i32_0 = arith.constant 0 : i32
    return %arg0, %c0_i32 : i32, i32
  }
  func.func @transform_1(%arg0: i32) -> (i32, i32) {
    %c0_i32 = arith.constant 0 : i32
    %c0_i32_0 = arith.constant 0 : i32
    %c0_i32_1 = arith.constant 0 : i32
    return %c0_i32, %c0_i32_0 : i32, i32
  }
  func.func @transform_2(%arg0: i32) -> (i32, i32) {
    %c0_i32 = arith.constant 0 : i32
    %c0_i32_0 = arith.constant 0 : i32
    %c0_i32_1 = arith.constant 0 : i32
    return %c0_i32, %c0_i32_0 : i32, i32
  }
  func.func @transform_3(%arg0: i32) -> (i32, i32) {
    %c0_i32 = arith.constant 0 : i32
    %c0_i32_0 = arith.constant 0 : i32
    %c0_i32_1 = arith.constant 0 : i32
    return %c0_i32, %c0_i32_0 : i32, i32
  }
  func.func @transform_4(%arg0: i32) -> (i32, i32) {
    %c0_i32 = arith.constant 0 : i32
    %c0_i32_0 = arith.constant 0 : i32
    %c0_i32_1 = arith.constant 0 : i32
    return %c0_i32, %c0_i32_0 : i32, i32
  }
  func.func @transform_5(%arg0: i32) -> i32 {
    %c0_i32 = arith.constant 0 : i32
    %c0_i32_0 = arith.constant 0 : i32
    return %c0_i32 : i32
  }
}

</mosaic_0001>

<bundles_post_ra>
// kernel: tpu_custom_call.1
= control target key start
LH: loop header
LB: loop body
LE: loop exit
PB: predicated region body
PF: predicated region fallthrough
CT: control target
= control target key end

     0   :  { %10 = vsyncpa [#allocation6], 0  ;;  %s571_s0 = inlined_call_operand.hbm [shape: f32[8,20], index: 0, kind: input, shape index: {}]   ;;  %s572_s1 = inlined_call_operand.hbm [shape: f32[20,20], index: 1, kind: input, shape index: {}]   ;;  %s573_s2 = inlined_call_operand.vmem [shape: f32[1,20], index: 2, kind: input, shape index: {}]   ;;  %s574_s3 = inlined_call_operand.hbm [shape: f32[20,20], index: 3, kind: input, shape index: {}]   ;;  %s575_s4 = inlined_call_operand.vmem [shape: f32[1,20], index: 4, kind: input, shape index: {}]   ;;  %s576_s5 = inlined_call_operand.hbm [shape: f32[1], index: 5, kind: output, shape index: {}]  }
   0x1   :  { %11 = vsyncpa [#allocation9], 0 }
   0x2   :  { %12 = vsyncpa [#allocation7], 0  ;;  %s505_s18 = smov [#allocation8]  }
   0x3   :  { %s28_s19 = sshll.u32 %s505_s18, 4  ;;  %s29_s19 = int_to_ptr.vmem [resolvable:$true] %s28_s19 }
   0x4   :  { %s415_s20 = scalar_lea.vmem %s29_s19, 384  ;;  %p420_p1 = scmp.lt.s32.totalorder %s29_s19, %s29_s19 }
   0x5   :  { %p416_p0 = scmp.ne.s32.totalorder %s29_s19, %s415_s20  ;;  %p421_p2 = scmp.lt.s32.totalorder %s415_s20, %s415_s20 }
   0x7   :  { %p422_p3 = por %p421_p2, %p420_p1 }
   0x9   :  { %p423_p4 = pnand %p422_p3, %p416_p0 }
   0xb   :  { %426 = shalt.err (!%p423_p4)
}
   0xc   :  { %s506_s21 = smov 128   ;;  %s507_s22 = smov 8  }
   0xd   :  { %34 = dma.hbm_to_vmem [thread:$0]  %s572_s1, 384, %s29_s19, [#allocation9], %s506_s21, %s506_s21, %s507_s22  }
   0xe   :  { %s508_s25 = smov [#allocation5]   ;;  %s509_s27 = smov [#allocation10]  }
   0xf   :  { %s19_s26 = sshll.u32 %s508_s25, 4  ;;  %s42_s28 = sshll.u32 %s509_s27, 4  ;;  %s20_s26 = int_to_ptr.vmem [resolvable:$true] %s19_s26  ;;  %s43_s28 = int_to_ptr.vmem [resolvable:$true] %s42_s28 }
  0x10   :  { %s435_s29 = scalar_lea.vmem %s20_s26, 128  ;;  %p440_p6 = scmp.lt.s32.totalorder %s20_s26, %s20_s26 }
  0x11   :  { %p436_p5 = scmp.ne.s32.totalorder %s20_s26, %s435_s29  ;;  %p441_p7 = scmp.lt.s32.totalorder %s435_s29, %s435_s29 }
  0x13   :  { %p442_p8 = por %p441_p7, %p440_p6 }
  0x15   :  { %p443_p9 = pnand %p442_p8, %p436_p5 }
  0x17   :  { %446 = shalt.err (!%p443_p9)
}
  0x18   :  { %22 = dma.hbm_to_vmem [thread:$0]  %s571_s0, 128, %s20_s26, [#allocation6]  }
  0x19   :  { %s455_s7 = scalar_lea.vmem %s43_s28, 384  ;;  %p460_p11 = scmp.lt.s32.totalorder %s43_s28, %s43_s28 }
  0x1a   :  { %p456_p10 = scmp.ne.s32.totalorder %s43_s28, %s455_s7  ;;  %p461_p12 = scmp.lt.s32.totalorder %s455_s7, %s455_s7 }
  0x1c   :  { %p462_p13 = por %p461_p12, %p460_p11 }
  0x1e   :  { %p463_p0 = pnand %p462_p13, %p456_p10 }
  0x20   :  { %466 = shalt.err (!%p463_p0)
}
  0x21   :  { %48 = dma.hbm_to_vmem [thread:$0]  %s574_s3, 384, %s43_s28, [#allocation9], %s506_s21, %s506_s21, %s507_s22  }
  0x22   :  { %487 = dma.done.wait [#allocation6], 128  }
  0x23   :  { %488 = vsyncadd [#allocation6], 4294967168 }
  0x24   :  { %489 = dma.done.wait [#allocation9], 768  }
  0x25   :  { %490 = vsyncadd [#allocation9], 4294966528  ;;  %v510_v0 = vmov 0.0   ;;  %vm511_vm0 = vmmov 0   ;;  %vm82_vm1 = vcmask 1043456   ;;  %v69_v2 = vld [vmem:[#allocation8 + $0x8] sm:$0xff]  ;;  %v243_v13 = vlaneseq }
  0x26   :  { %353 = vmatprep.subr.mxu0 %v510_v0  ;;  %359 = vmatprep.mubr.msk.f32.mxu0 %vm511_vm0, %v510_v0  ;;  %v70_v1 = vld [vmem:[#allocation8 + $0x10] sm:$0xf]  ;;  %v68_v3 = vld [vmem:[#allocation8] sm:$0xff]  ;;  %v67_v4 = vld [vmem:[#allocation5] sm:$0xff]  ;;  %vm78_vm2 = vcmask 162816   ;;  %vm64_vm3 = vcmask 155648  }
  0x27   :  { %362 = vmatprep.subr.mxu1 %v510_v0  ;;  %368 = vmatprep.mubr.msk.f32.mxu1 %vm511_vm0, %v510_v0  ;;  %v159_v5 = vld [vmem:[#allocation10 + $0x10] sm:$0xf]  ;;  %v158_v6 = vld [vmem:[#allocation10 + $0x8] sm:$0xff]  ;;  %v157_v7 = vld [vmem:[#allocation10] sm:$0xff]  ;;  %65 = vst.msk [vmem:[#allocation2] sm:$0x1] %vm64_vm3, %v510_v0 }
  0x28   :  { %354 = vmatpush3.msk.msra.mxu0 %vm82_vm1, %v70_v1  ;;  %363 = vmatpush3.msk.msra.mxu1 %vm82_vm1, %v159_v5  ;;  %v338_v8 = vld [vmem:[%s573_s2] ss:$0 sm:$0xff]  ;;  %66 = vst.msk [vmem:[#allocation3] sm:$0x1] %vm64_vm3, %v510_v0  ;;  %v244_v14 = vshrl.u32 %v243_v13, 7 }
  0x29   :  { %355 = vmatprep.subr.mxu0 %v510_v0  ;;  %364 = vmatprep.subr.mxu1 %v510_v0  ;;  %v341_v15 = vld [vmem:[%s575_s4] ss:$0 sm:$0xff] }
  0x2a   :  { %356 = vmatpush3.msra.mxu0 %v69_v2  ;;  %365 = vmatpush3.msra.mxu1 %v158_v6  ;;  %vm248_vm4 = vcmp.lt.s32.totalorder %v244_v14, 2 }
  0x2b   :  { %357 = vmatprep.subr.mxu0 %v510_v0  ;;  %366 = vmatprep.subr.mxu1 %v510_v0 }
  0x2c   :  { %358 = vmatpush3.msra.mxu0 %v68_v3  ;;  %367 = vmatpush3.msra.mxu1 %v157_v7 }
  0x2d   :  { %360 = vmatmul.mubr.msk.f32.vlgmr.msra.gmra.mxu0 %vm78_vm2, %v67_v4 }
  0x2e   :  { %v250_v35 = vld [vmem:[#allocation2] sm:$0x1] }
  0x2f   :  { %v262_v32 = vld [vmem:[#allocation3] sm:$0x1] }
  0xed   :  { %v152_v9 = vpop.f32.mrf.mxu0 }
  0xee   :  { %v153_v10 = vadd.f32 %v338_v8, %v152_v9 }
  0xef   :  { %v361_v11 = vpop.f32.mrf.mxu0 }
  0xf0   :  { %v156_v12 = vmax.f32 %v153_v10, 0.0 }
  0xf2   :  { %369 = vmatmul.mubr.msk.f32.vlgmr.msra.gmra.mxu1 %vm78_vm2, %v156_v12 }
 0x1b2   :  { %v239_v16 = vpop.f32.mrf.mxu1 }
 0x1b3   :  { %v240_v17 = vadd.f32 %v341_v15, %v239_v16 }
 0x1b4   :  { %v370_v18 = vpop.f32.mrf.mxu1 }
 0x1b5   :  { %v249_v19 = vsel %vm248_vm4, %v240_v17, 0.0 }
 0x1b6   :  { %v251_v20 = vand.u32 2147483647, %v249_v19  ;;  %v263_v21 = vsel %vm78_vm2, %v249_v19, 0.0 }
 0x1b7   :  { %v264_v22 = vrot.slane %v263_v21, 4 }
 0x1b8   :  { %v252_v23 = vsel %vm78_vm2, %v251_v20, 0.0 }
 0x1b9   :  { %v253_v24 = vrot.slane %v252_v23, 4  ;;  %v265_v25 = vadd.f32 %v264_v22, %v263_v21 }
 0x1bb   :  { %v254_v26 = vadd.f32 %v253_v24, %v252_v23  ;;  %v266_v27 = vrot.slane %v265_v25, 2 }
 0x1bd   :  { %v255_v28 = vrot.slane %v254_v26, 2  ;;  %v267_v29 = vadd.f32 %v266_v27, %v265_v25 }
 0x1bf   :  { %v256_v30 = vadd.f32 %v255_v28, %v254_v26  ;;  %v268_v31 = vrot.slane %v267_v29, 1 }
 0x1c1   :  { %v257_v33 = vrot.slane %v256_v30, 1  ;;  %v269_v34 = vadd.f32 %v268_v31, %v267_v29 }
 0x1c3   :  { %v258_v36 = vadd.f32 %v257_v33, %v256_v30  ;;  %v270_v37 = vadd.f32 %v269_v34, %v262_v32 }
 0x1c5   :  { %v259_v38 = vadd.f32 %v258_v36, %v250_v35  ;;  %271 = vst.msk [vmem:[#allocation3] sm:$0x1] %vm64_vm3, %v270_v37 }
 0x1c7   :  { %261 = vst.msk [vmem:[#allocation2] sm:$0x1] %vm64_vm3, %v259_v38 }
 0x1cc   :  { %v288_v41 = vld [vmem:[#allocation3] sm:$0x1] }
 0x1cd   :  { %v289_v42 = vsel %vm64_vm3, %v288_v41, 0.0 }
 0x1ce   :  { %v275_v39 = vld [vmem:[#allocation2] sm:$0x1] }
 0x1cf   :  { %v276_v40 = vsel %vm64_vm3, %v275_v39, 0.0 }
 0x1d0   :  { %277 = vadd.xlane.f32.xlu0 %v276_v40 }
 0x1d4   :  { %290 = vadd.xlane.f32.xlu0 %v289_v42 }
 0x259   :  { %v278_v43 = vpop.xlane.xlu0 %277 }
 0x25a   :  { %v279_v44 = vrot.slane %v278_v43, 4 }
 0x25c   :  { %v280_v45 = vadd.f32 %v279_v44, %v278_v43 }
 0x25d   :  { %v291_v46 = vpop.xlane.xlu0 %290 }
 0x25e   :  { %v281_v47 = vrot.slane %v280_v45, 2  ;;  %v292_v48 = vrot.slane %v291_v46, 4 }
 0x260   :  { %v293_v49 = vadd.f32 %v292_v48, %v291_v46  ;;  %v282_v50 = vadd.f32 %v281_v47, %v280_v45 }
 0x262   :  { %v294_v51 = vrot.slane %v293_v49, 2  ;;  %v283_v52 = vrot.slane %v282_v50, 1 }
 0x264   :  { %v295_v53 = vadd.f32 %v294_v51, %v293_v49  ;;  %v284_v54 = vadd.f32 %v283_v52, %v282_v50 }
 0x266   :  { %371 = vpush %v284_v54  ;;  %v296_v55 = vrot.slane %v295_v53, 1 }
 0x268   :  { %v297_v56 = vadd.f32 %v296_v55, %v295_v53 }
 0x26a   :  { %373 = vpush %v297_v56 }
 0x297   :  { %s372_s2 = spop %371  }
 0x298   :  { %p331_p1 = scmp.gt.f32.partialorder %s372_s2, 1.0 }
 0x299   :  { %s497_s13 = smov (%p331_p1), %s372_s2  }
 0x29a   :  { %333 = sbr.rel (!%p331_p1) target bundleno = 680 (0x2a8), region = 64 }
 0x29b   :  { %s374_s4 = spop %373  }
 0x29c   :  { %s501_s11 = smov %s374_s4   ;;  %s493_s12 = smov (%p331_p1), %s374_s4  }
 0x29f LB: > { %s310_s13 = smul.f32 0.5, %s499_s13   ;;  %s499_s13 = sphi %s497_s13, %s310_s13   ;;  %s495_s12 = sphi %s493_s12, %s494_s12  }
 0x2a0   : > { %s311_s14 = smul.f32 0.5, %s495_s12  }
 0x2a1   : > { %p306_p2 = scmp.gt.f32.partialorder %s310_s13, 1.0 }
 0x2a2   : > { %s494_s12 = smov %s311_s14   ;;  %s502_s11 = smov (!%p306_p2), %s311_s14  }
 0x2a3   :  { %309 = sbr.rel (%p306_p2) target bundleno = 671 (0x29f), region = 70 }
 0x2a8 PF:  { %313 = sst [smem:[#allocation11]] %s503_s11  ;;  %s512_s15 = smov [#allocation11]   ;;  %s503_s11 = sphi %s501_s11, %s502_s11  }
 0x2a9   :  { %321 = dma.smem_to_hbm %s512_s15, 16, %s576_s5, [#allocation7]  }
 0x2aa   :  { %491 = dma.done.wait [#allocation7], 16  }
 0x2ab   :  { %492 = vsyncadd [#allocation7], 4294967280 }
 0x2ac   :  { %325 = sfence }
 0x2ad   :  { %326 = vsyncpa [#allocation6], 1 }
 0x2ae   :  { %327 = vsyncpa [#allocation9], 1 }
 0x2af   :  { %328 = vsyncpa [#allocation7], 1 }

</bundles_post_ra>
